<compile_context>
chip_gen: v7x
topology: tpu7x:2x2x1
jax: 0.10.0
libtpu: 0.0.40
codegen_flags: <defaults>
</compile_context>

<pallas_src>
import functools

import jax
import jax.numpy as jnp
from jax.experimental import pallas as pl
from jax.experimental.pallas import tpu as pltpu
from jax.flatten_util import ravel_pytree

# ----------------------------- hyper-params (scaled-down) --------------------
FEAT = 64     # stand-in for the 512-d backbone feature
DIM = 32      # stand-in for dim=128 projection
K = 256       # stand-in for K=4096 memory bank size
TEM = 0.05    # teacher temperature
T_STUDENT = 0.1
M1 = 0.99
M2 = 0.95

_VMEM_LIMIT = 32 * 1024 * 1024   # safe on v5e/v6e (128 MiB phys) and v7x (64 MiB)


# ----------------------------- small helpers ---------------------------------
def _round_up(x, m):
    return ((x + m - 1) // m) * m


def _pick_sublane_tile(total, pref):
    """Largest multiple-of-8 divisor of `total` that is <= pref (else total)."""
    if total <= pref:
        return total
    pref -= pref % 8
    for t in range(pref, 7, -8):
        if total % t == 0:
            return t
    return total


def _pick_lane_tile(total, pref):
    """Largest multiple-of-128 divisor of `total` that is <= pref (else total)."""
    if total <= pref:
        return total
    pref -= pref % 128
    for t in range(pref, 127, -128):
        if total % t == 0:
            return t
    return total


# ----------------------------- Pallas kernels --------------------------------
def _ema2_kernel(p_ref, e1_ref, e2_ref, o1_ref, o2_ref, *, m1, m2):
    # model_ema = m * model_ema + (1 - m) * model   (update_momentum), two EMAs
    # of the same student params fused so the params are streamed once.
    p = p_ref[...]
    o1_ref[...] = m1 * e1_ref[...] + (1.0 - m1) * p
    o2_ref[...] = m2 * e2_ref[...] + (1.0 - m2) * p


def _enc_gap_kernel(x_ref, w_ref, b_ref, o_ref, acc_ref, *, inv_hw):
    """conv-as-GEMM + ReLU + fused global-average-pool (per batch element)."""
    @pl.when(pl.program_id(1) == 0)
    def _():
        acc_ref[...] = jnp.zeros_like(acc_ref)

    x = x_ref[0]                                    # (ST, Kdp) spatial tile
    y = jnp.dot(x, w_ref[...], preferred_element_type=jnp.float32) + b_ref[...]
    y = jnp.maximum(y, 0.0)
    acc_ref[...] += jnp.sum(y, axis=0, keepdims=True)

    @pl.when(pl.program_id(1) == pl.num_programs(1) - 1)
    def _():
        o_ref[0] = acc_ref[...] * inv_hw


def _head_kernel(x_ref, w1_ref, b1_ref, g_ref, beta_ref, w2_ref, b2_ref,
                 o_ref, *, eps):
    """MoCoHead fused: Linear -> BN1d(batch stats) -> ReLU -> Linear."""
    x = x_ref[...]
    h = jnp.dot(x, w1_ref[...], preferred_element_type=jnp.float32) + b1_ref[...]
    mean = jnp.mean(h, axis=0, keepdims=True)
    c = h - mean
    var = jnp.mean(c * c, axis=0, keepdims=True)    # biased, like PyTorch BN
    h = c * jax.lax.rsqrt(var + eps)
    h = h * g_ref[...] + beta_ref[...]
    h = jnp.maximum(h, 0.0)
    o_ref[...] = jnp.dot(h, w2_ref[...], preferred_element_type=jnp.float32) \
        + b2_ref[...]


def _l2norm_cols_kernel(q_ref, o_ref):
    """L2-normalize each column (feature axis = sublanes) of the (C, K) queue."""
    q = q_ref[...].astype(jnp.float32)
    ss = jnp.sum(q * q, axis=0, keepdims=True)
    # == q / max(||q||, 1e-12), matching F.normalize eps.
    o_ref[...] = q * jax.lax.rsqrt(jnp.maximum(ss, 1e-24))


def _msvq_loss_kernel(z1_ref, z2_ref, z3_ref, z4_ref, q1_ref, q2_ref,
                      o1_ref, o2_ref, o3_ref, *, tem, t_s):
    """Fused soft-CE for the three MSVQ losses.

    Student log-softmax for queue_1 is shared between loss1 and loss2.
    Queues arrive pre-normalized in (C, K) layout, so logits = z @ q with no
    transposes.  Outputs are lane-dense (1, K) column partial sums of
    p_teacher * log_p_student, accumulated across row (batch) tiles; the host
    finishes with -sum(...)/N.
    """
    i = pl.program_id(0)

    @pl.when(i == 0)
    def _():
        o1_ref[...] = jnp.zeros_like(o1_ref)
        o2_ref[...] = jnp.zeros_like(o2_ref)
        o3_ref[...] = jnp.zeros_like(o3_ref)

    def l2n(v):  # F.normalize(v, dim=1), eps=1e-12
        ss = jnp.sum(v * v, axis=-1, keepdims=True)
        return v * jax.lax.rsqrt(jnp.maximum(ss, 1e-24))

    def log_softmax(logits):
        s = logits - jnp.max(logits, axis=-1, keepdims=True)
        return s - jnp.log(jnp.sum(jnp.exp(s), axis=-1, keepdims=True))

    def softmax(logits):
        p = jnp.exp(logits - jnp.max(logits, axis=-1, keepdims=True))
        return p * pl.reciprocal(jnp.sum(p, axis=-1, keepdims=True), approx=True)

    z1 = l2n(z1_ref[...].astype(jnp.float32))        # student
    z2 = l2n(z2_ref[...].astype(jnp.float32))        # teachers
    z3 = l2n(z3_ref[...].astype(jnp.float32))
    z4 = l2n(z4_ref[...].astype(jnp.float32))
    q1 = q1_ref[...]                                 # (C, K) pre-normalized
    q2 = q2_ref[...]

    inv_ts = 1.0 / t_s
    inv_tt = 1.0 / tem
    logp_11 = log_softmax(
        jnp.dot(z1, q1, preferred_element_type=jnp.float32) * inv_ts)
    logp_12 = log_softmax(
        jnp.dot(z1, q2, preferred_element_type=jnp.float32) * inv_ts)
    p_21 = softmax(jnp.dot(z2, q1, preferred_element_type=jnp.float32) * inv_tt)
    p_31 = softmax(jnp.dot(z3, q1, preferred_element_type=jnp.float32) * inv_tt)
    p_42 = softmax(jnp.dot(z4, q2, preferred_element_type=jnp.float32) * inv_tt)

    o1_ref[...] += jnp.sum(p_21 * logp_11, axis=0, keepdims=True)
    o2_ref[...] += jnp.sum(p_31 * logp_11, axis=0, keepdims=True)
    o3_ref[...] += jnp.sum(p_42 * logp_12, axis=0, keepdims=True)


# ----------------------------- Pallas wrappers --------------------------------
def ema_update_pair(params, ema1, ema2, m1, m2):
    """update_momentum fused for two teachers of the same student tree."""
    flat_p, _ = ravel_pytree(params)
    flat_1, unravel = ravel_pytree(ema1)
    flat_2, _ = ravel_pytree(ema2)
    n = flat_p.shape[0]
    pad_lane = (-n) % 128

    def prep(f):
        return jnp.pad(f.astype(jnp.float32), (0, pad_lane)).reshape(-1, 128)

    fp, f1, f2 = prep(flat_p), prep(flat_1), prep(flat_2)
    r = fp.shape[0]
    tr = min(2048, _round_up(r, 8))          # ~1 MiB per operand tile at 2048
    rp = _round_up(r, tr)
    if rp != r:
        pad_rows = ((0, rp - r), (0, 0))
        fp = jnp.pad(fp, pad_rows)
        f1 = jnp.pad(f1, pad_rows)
        f2 = jnp.pad(f2, pad_rows)

    spec = pl.BlockSpec((tr, 128), lambda i: (i, 0))
    o1, o2 = pl.pallas_call(
        functools.partial(_ema2_kernel, m1=float(m1), m2=float(m2)),
        out_shape=(jax.ShapeDtypeStruct((rp, 128), jnp.float32),
                   jax.ShapeDtypeStruct((rp, 128), jnp.float32)),
        grid=(rp // tr,),
        in_specs=[spec, spec, spec],
        out_specs=(spec, spec),
        compiler_params=pltpu.CompilerParams(
            dimension_semantics=("parallel",),
            vmem_limit_bytes=_VMEM_LIMIT),
    )(fp, f1, f2)
    return unravel(o1.reshape(-1)[:n]), unravel(o2.reshape(-1)[:n])


def l2_normalize_queue(bank_ck):
    """Normalize queue columns once per step; bank stays in native (C, K)."""
    c, k_ = bank_ck.shape
    tk = _pick_lane_tile(k_, 512)
    spec = pl.BlockSpec((c, tk), lambda i: (0, i))
    return pl.pallas_call(
        _l2norm_cols_kernel,
        out_shape=jax.ShapeDtypeStruct((c, k_), jnp.float32),
        grid=(k_ // tk,),
        in_specs=[spec],
        out_specs=spec,
        compiler_params=pltpu.CompilerParams(
            dimension_semantics=("parallel",),
            vmem_limit_bytes=_VMEM_LIMIT),
    )(bank_ck)


def encoder_fwd(params, x):
    """Stand-in backbone: conv3x3(SAME) + ReLU + global avg pool.  x: NCHW."""
    b, c, h, w = x.shape
    patches = jax.lax.conv_general_dilated_patches(
        x, filter_shape=(3, 3), window_strides=(1, 1), padding="SAME",
        dimension_numbers=("NCHW", "OIHW", "NCHW"))          # (B, C*9, H, W)
    kd = c * 9
    kdp, feat = params["w"].shape                            # weight is (Kdp, FEAT)
    hw = h * w
    pm = patches.transpose(0, 2, 3, 1).reshape(b, hw, kd)
    pm = jnp.pad(pm, ((0, 0), (0, 0), (0, kdp - kd)))        # lane-align contraction
    st = _pick_sublane_tile(hw, 512)                         # spatial tile

    out = pl.pallas_call(
        functools.partial(_enc_gap_kernel, inv_hw=1.0 / hw),
        out_shape=jax.ShapeDtypeStruct((b, 1, feat), jnp.float32),
        grid=(b, hw // st),
        in_specs=[
            pl.BlockSpec((1, st, kdp), lambda bi, si: (bi, si, 0)),
            pl.BlockSpec((kdp, feat), lambda bi, si: (0, 0)),
            pl.BlockSpec((1, feat), lambda bi, si: (0, 0)),
        ],
        out_specs=pl.BlockSpec((1, 1, feat), lambda bi, si: (bi, 0, 0)),
        scratch_shapes=[pltpu.VMEM((1, feat), jnp.float32)],
        compiler_params=pltpu.CompilerParams(
            dimension_semantics=("parallel", "arbitrary"),
            vmem_limit_bytes=_VMEM_LIMIT),
    )(pm, params["w"], params["b"])
    return out.reshape(b, feat)


def head_fwd(params, x):
    """MoCoHead fused into one kernel (BN batch-stats need the whole batch)."""
    b, feat = x.shape
    dim = params["w2"].shape[1]
    return pl.pallas_call(
        functools.partial(_head_kernel, eps=1e-5),
        out_shape=jax.ShapeDtypeStruct((b, dim), jnp.float32),
        grid=(1,),
        in_specs=[
            pl.BlockSpec((b, feat), lambda i: (0, 0)),
            pl.BlockSpec((feat, feat), lambda i: (0, 0)),
            pl.BlockSpec((1, feat), lambda i: (0, 0)),
            pl.BlockSpec((1, feat), lambda i: (0, 0)),
            pl.BlockSpec((1, feat), lambda i: (0, 0)),
            pl.BlockSpec((feat, dim), lambda i: (0, 0)),
            pl.BlockSpec((1, dim), lambda i: (0, 0)),
        ],
        out_specs=pl.BlockSpec((b, dim), lambda i: (0, 0)),
        compiler_params=pltpu.CompilerParams(
            dimension_semantics=("arbitrary",),
            vmem_limit_bytes=_VMEM_LIMIT),
    )(x, params["w1"], params["b1"], params["gamma"], params["beta"],
      params["w2"], params["b2"])


def msvq_losses(z1, z2, z3, z4, q1n, q2n, tem, t_student):
    """Three fused soft-CE losses; shared student log-softmax for queue_1."""
    n, c = z1.shape
    k_ = q1n.shape[1]
    tn = _pick_sublane_tile(n, 128)
    zspec = pl.BlockSpec((tn, c), lambda i: (i, 0))
    qspec = pl.BlockSpec((c, k_), lambda i: (0, 0))
    ospec = pl.BlockSpec((1, k_), lambda i: (0, 0))
    oshape = jax.ShapeDtypeStruct((1, k_), jnp.float32)
    s1, s2, s3 = pl.pallas_call(
        functools.partial(_msvq_loss_kernel, tem=float(tem), t_s=float(t_student)),
        out_shape=(oshape, oshape, oshape),
        grid=(n // tn,),
        in_specs=[zspec, zspec, zspec, zspec, qspec, qspec],
        out_specs=(ospec, ospec, ospec),
        compiler_params=pltpu.CompilerParams(
            dimension_semantics=("arbitrary",),
            vmem_limit_bytes=_VMEM_LIMIT),
    )(z1, z2, z3, z4, q1n, q2n)
    inv_n = 1.0 / n
    return (-jnp.sum(s1) * inv_n, -jnp.sum(s2) * inv_n, -jnp.sum(s3) * inv_n)


# ----------------------------- model pieces -----------------------------------
def init_encoder(key, cin=3, feat=FEAT):
    kd = cin * 9
    kdp = _round_up(kd, 128)                 # lane-aligned contraction dim
    w = jnp.zeros((kdp, feat), jnp.float32)  # pre-transposed (Kd, N); pad rows = 0
    w = w.at[:kd].set(0.05 * jax.random.normal(key, (kd, feat), jnp.float32))
    return {"w": w, "b": jnp.zeros((1, feat), jnp.float32)}


def init_head(key, feat=FEAT, dim=DIM):
    k1, k2 = jax.random.split(key)
    return {
        "w1": 0.05 * jax.random.normal(k1, (feat, feat), jnp.float32),  # (in, out)
        "b1": jnp.zeros((1, feat), jnp.float32),
        "gamma": jnp.ones((1, feat), jnp.float32),
        "beta": jnp.zeros((1, feat), jnp.float32),
        "w2": 0.05 * jax.random.normal(k2, (feat, dim), jnp.float32),   # (in, out)
        "b2": jnp.zeros((1, dim), jnp.float32),
    }


def batch_shuffle(x, key):
    perm = jax.random.permutation(key, x.shape[0])
    return x[perm], perm


def batch_unshuffle(z, perm):
    return z[jnp.argsort(perm)]


# ----------------------------- MSVQ forward -----------------------------------
def msvq_forward(state, im_1, im_2, im_3, im_4, labels, key,
                 tem=TEM, m1=M1, m2=M2):
    # fused momentum updates (student params streamed from HBM once per pair)
    f_t1, f_t2 = ema_update_pair(state["net"], state["f_t1"], state["f_t2"], m1, m2)
    g_t1, g_t2 = ema_update_pair(state["g_s"], state["g_t1"], state["g_t2"], m1, m2)

    k2, k3, k4 = jax.random.split(key, 3)
    b = im_1.shape[0]

    z_1 = head_fwd(state["g_s"], encoder_fwd(state["net"], im_1))

    im_2s, p2 = batch_shuffle(im_2, k2)
    im_3s, p3 = batch_shuffle(im_3, k3)
    # Batch the two f_t1 encoder passes into one GEMM (the stand-in encoder is
    # per-sample, so this is numerically identical); the heads run separately
    # so BN batch statistics match the per-branch PyTorch semantics.
    feats_23 = encoder_fwd(f_t1, jnp.concatenate([im_2s, im_3s], axis=0))
    z_2 = batch_unshuffle(head_fwd(g_t1, feats_23[:b]), p2)
    z_3 = batch_unshuffle(head_fwd(g_t1, feats_23[b:]), p3)

    im_4s, p4 = batch_shuffle(im_4, k4)
    z_4 = batch_unshuffle(head_fwd(g_t2, encoder_fwd(f_t2, im_4s)), p4)

    # queues stay in native (C, K) layout; columns L2-normalized once per step
    q1n = l2_normalize_queue(state["bank1"])
    q2n = l2_normalize_queue(state["bank2"])
    # TODO(synk): the ring-buffer enqueue of z_2 / z_4 into the banks (stateful
    # side effect) and the unused `labels` bookkeeping are omitted here; the
    # loss uses the pre-update snapshot exactly as the PyTorch MemoryBankModule
    # returns it.

    loss1, loss2, loss3 = msvq_losses(z_1, z_2, z_3, z_4, q1n, q2n, tem, T_STUDENT)
    return (loss1 + loss2 + loss3) / 3.0


# ----------------------------- main --------------------------------------------
if __name__ == "__main__":
    root = jax.random.PRNGKey(0)
    k_net, k_head, k_b1, k_b2, k_im, k_shuf = jax.random.split(root, 6)

    B, C, H, W = 8, 3, 8, 8
    net = init_encoder(k_net, cin=C)
    g_s = init_head(k_head)
    state = {
        "net": net,
        "f_t1": jax.tree_util.tree_map(lambda a: a, net),   # deepcopy
        "f_t2": jax.tree_util.tree_map(lambda a: a, net),
        "g_s": g_s,
        "g_t1": jax.tree_util.tree_map(lambda a: a, g_s),
        "g_t2": jax.tree_util.tree_map(lambda a: a, g_s),
        "bank1": jax.random.normal(k_b1, (DIM, K), jnp.float32),
        "bank2": jax.random.normal(k_b2, (DIM, K), jnp.float32),
    }

    ki1, ki2, ki3, ki4 = jax.random.split(k_im, 4)
    im_1 = jax.random.normal(ki1, (B, C, H, W), jnp.float32)
    im_2 = jax.random.normal(ki2, (B, C, H, W), jnp.float32)
    im_3 = jax.random.normal(ki3, (B, C, H, W), jnp.float32)
    im_4 = jax.random.normal(ki4, (B, C, H, W), jnp.float32)
    labels = jnp.arange(B, dtype=jnp.int32)

    loss = msvq_forward(state, im_1, im_2, im_3, im_4, labels, k_shuf)
    jax.block_until_ready(loss)
    assert loss.shape == () and bool(jnp.isfinite(loss))
    print("KERNEL_OK")
</pallas_src>

<mosaic_0001>
module attributes {stable_mosaic.version = 11 : i64} {
  func.func @_ema2_kernel(%arg0: i32, %arg1: memref<72x128xf32, #tpu.memory_space<vmem>>, %arg2: memref<72x128xf32, #tpu.memory_space<vmem>>, %arg3: memref<72x128xf32, #tpu.memory_space<vmem>>, %arg4: memref<72x128xf32, #tpu.memory_space<vmem>>, %arg5: memref<72x128xf32, #tpu.memory_space<vmem>>) attributes {dimension_semantics = [#tpu.dimension_semantics<parallel>], iteration_bounds = array<i64: 1>, scalar_prefetch = 0 : i64, scratch_operands = 0 : i64, tpu.core_type = #tpu.core_type<tc>, window_params = [{transform_indices = @transform_0, window_bounds = array<i64: 72, 128>}, {transform_indices = @transform_1, window_bounds = array<i64: 72, 128>}, {transform_indices = @transform_2, window_bounds = array<i64: 72, 128>}, {transform_indices = @transform_3, window_bounds = array<i64: 72, 128>}, {transform_indices = @transform_4, window_bounds = array<i64: 72, 128>}]} {
    %c0 = arith.constant 0 : index
    %c0_0 = arith.constant 0 : index
    %0 = vector.load %arg1[%c0, %c0_0] : memref<72x128xf32, #tpu.memory_space<vmem>>, vector<72x128xf32>
    %c0_1 = arith.constant 0 : index
    %c0_2 = arith.constant 0 : index
    %1 = vector.load %arg2[%c0_1, %c0_2] : memref<72x128xf32, #tpu.memory_space<vmem>>, vector<72x128xf32>
    %cst = arith.constant 9.900000e-01 : f32
    %2 = vector.broadcast %cst : f32 to vector<72x128xf32>
    %3 = arith.mulf %2, %1 : vector<72x128xf32>
    %cst_3 = arith.constant 0.00999999977 : f32
    %4 = vector.broadcast %cst_3 : f32 to vector<72x128xf32>
    %5 = arith.mulf %4, %0 : vector<72x128xf32>
    %6 = arith.addf %3, %5 : vector<72x128xf32>
    %c0_4 = arith.constant 0 : index
    %c0_5 = arith.constant 0 : index
    %7 = vector.load %arg4[%c0_4, %c0_5] : memref<72x128xf32, #tpu.memory_space<vmem>>, vector<72x128xf32>
    tpu.vector_store %arg4[%c0_4, %c0_5], %6 {strides = array<i32>} : memref<72x128xf32, #tpu.memory_space<vmem>>, vector<72x128xf32>,
    %c0_6 = arith.constant 0 : index
    %c0_7 = arith.constant 0 : index
    %8 = vector.load %arg3[%c0_6, %c0_7] : memref<72x128xf32, #tpu.memory_space<vmem>>, vector<72x128xf32>
    %cst_8 = arith.constant 0.949999988 : f32
    %9 = vector.broadcast %cst_8 : f32 to vector<72x128xf32>
    %10 = arith.mulf %9, %8 : vector<72x128xf32>
    %cst_9 = arith.constant 5.000000e-02 : f32
    %11 = vector.broadcast %cst_9 : f32 to vector<72x128xf32>
    %12 = arith.mulf %11, %0 : vector<72x128xf32>
    %13 = arith.addf %10, %12 : vector<72x128xf32>
    %c0_10 = arith.constant 0 : index
    %c0_11 = arith.constant 0 : index
    %14 = vector.load %arg5[%c0_10, %c0_11] : memref<72x128xf32, #tpu.memory_space<vmem>>, vector<72x128xf32>
    tpu.vector_store %arg5[%c0_10, %c0_11], %13 {strides = array<i32>} : memref<72x128xf32, #tpu.memory_space<vmem>>, vector<72x128xf32>,
    return
  }
  func.func @transform_0(%arg0: i32) -> (i32, i32) {
    %c0_i32 = arith.constant 0 : i32
    %c0_i32_0 = arith.constant 0 : i32
    return %arg0, %c0_i32 : i32, i32
  }
  func.func @transform_1(%arg0: i32) -> (i32, i32) {
    %c0_i32 = arith.constant 0 : i32
    %c0_i32_0 = arith.constant 0 : i32
    return %arg0, %c0_i32 : i32, i32
  }
  func.func @transform_2(%arg0: i32) -> (i32, i32) {
    %c0_i32 = arith.constant 0 : i32
    %c0_i32_0 = arith.constant 0 : i32
    return %arg0, %c0_i32 : i32, i32
  }
  func.func @transform_3(%arg0: i32) -> (i32, i32) {
    %c0_i32 = arith.constant 0 : i32
    %c0_i32_0 = arith.constant 0 : i32
    return %arg0, %c0_i32 : i32, i32
  }
  func.func @transform_4(%arg0: i32) -> (i32, i32) {
    %c0_i32 = arith.constant 0 : i32
    %c0_i32_0 = arith.constant 0 : i32
    return %arg0, %c0_i32 : i32, i32
  }
}

</mosaic_0001>

<bundles_post_ra>
// kernel: tpu_custom_call.1
= control target key start
LH: loop header
LB: loop body
LE: loop exit
PB: predicated region body
PF: predicated region fallthrough
CT: control target
= control target key end

     0   :  { %10 = vsyncpa [#allocation3], 0  ;;  %s444_s0 = inlined_call_operand.hbm [shape: f32[72,128], index: 0, kind: input, shape index: {}]   ;;  %s445_s1 = inlined_call_operand.hbm [shape: f32[72,128], index: 1, kind: input, shape index: {}]   ;;  %s446_s2 = inlined_call_operand.hbm [shape: f32[72,128], index: 2, kind: input, shape index: {}]   ;;  %s447_s3 = inlined_call_operand.hbm [shape: f32[72,128], index: 3, kind: output, shape index: {0}]   ;;  %s448_s4 = inlined_call_operand.hbm [shape: f32[72,128], index: 4, kind: output, shape index: {1}]  }
   0x1   :  { %11 = vsyncpa [#allocation6], 0 }
   0x2   :  { %12 = vsyncpa [#allocation4], 0 }
   0x3   :  { %13 = vsyncpa [#allocation10], 0  ;;  %s317_s15 = smov [#allocation5]   ;;  %s318_s17 = smov [#allocation2]  }
   0x4   :  { %s31_s16 = sshll.u32 %s317_s15, 4  ;;  %s19_s18 = sshll.u32 %s318_s17, 4  ;;  %s32_s16 = int_to_ptr.vmem [resolvable:$true] %s31_s16  ;;  %s349_s18 = int_to_ptr.vmem [resolvable:$true] %s19_s18 }
   0x5   :  { %s199_s21 = scalar_lea.hbm %s445_s1, 1152 }
   0x6   :  { %p200_p0 = scmp.ne.s32.totalorder %s445_s1, %s199_s21  ;;  %p203_p1 = scmp.lt.u32.totalorder %s199_s21, %s445_s1 }
   0x8   :  { %p205_p2 = pnand %p203_p1, %p200_p0 }
   0xa   :  { %208 = shalt.err (!%p205_p2)
}
   0xb   :  { %s209_s26 = scalar_lea.vmem %s32_s16, 1152  ;;  %p214_p4 = scmp.lt.s32.totalorder %s32_s16, %s32_s16 }
   0xc   :  { %p210_p3 = scmp.ne.s32.totalorder %s32_s16, %s209_s26  ;;  %p215_p5 = scmp.lt.s32.totalorder %s209_s26, %s209_s26 }
   0xe   :  { %p216_p6 = por %p215_p5, %p214_p4 }
  0x10   :  { %p217_p7 = pnand %p216_p6, %p210_p3 }
  0x12   :  { %220 = shalt.err (!%p217_p7)
}
  0x13   :  { %s319_s27 = smov 128   ;;  %s320_s28 = smov 8  }
  0x14   :  { %37 = dma.hbm_to_vmem [thread:$0]  %s445_s1, 1152, %s32_s16, [#allocation6], %s319_s27, %s319_s27, %s320_s28  }
  0x15   :  { %s221_s7 = scalar_lea.hbm %s444_s0, 1152 }
  0x16   :  { %p222_p8 = scmp.ne.s32.totalorder %s444_s0, %s221_s7  ;;  %p225_p9 = scmp.lt.u32.totalorder %s221_s7, %s444_s0 }
  0x18   :  { %p227_p10 = pnand %p225_p9, %p222_p8 }
  0x1a   :  { %230 = shalt.err (!%p227_p10)
}
  0x1b   :  { %s231_s12 = scalar_lea.vmem %s349_s18, 1152  ;;  %p236_p12 = scmp.lt.s32.totalorder %s349_s18, %s349_s18 }
  0x1c   :  { %p232_p11 = scmp.ne.s32.totalorder %s349_s18, %s231_s12  ;;  %p237_p13 = scmp.lt.s32.totalorder %s231_s12, %s231_s12 }
  0x1e   :  { %p238_p0 = por %p237_p13, %p236_p12 }
  0x20   :  { %p239_p1 = pnand %p238_p0, %p232_p11 }
  0x22   :  { %242 = shalt.err (!%p239_p1)
}
  0x23   :  { %25 = dma.hbm_to_vmem [thread:$0]  %s444_s0, 1152, %s349_s18, [#allocation3], %s319_s27, %s319_s27, %s320_s28  }
  0x24   :  { %s321_s14 = smov [#allocation7]   ;;  %s243_s19 = scalar_lea.hbm %s446_s2, 1152 }
  0x25   :  { %s43_s15 = sshll.u32 %s321_s14, 4  ;;  %p244_p2 = scmp.ne.s32.totalorder %s446_s2, %s243_s19  ;;  %s44_s15 = int_to_ptr.vmem [resolvable:$true] %s43_s15 }
  0x26   :  { %p247_p3 = scmp.lt.u32.totalorder %s243_s19, %s446_s2 }
  0x28   :  { %p249_p4 = pnand %p247_p3, %p244_p2 }
  0x2a   :  { %252 = shalt.err (!%p249_p4)
}
  0x2b   :  { %s253_s24 = scalar_lea.vmem %s44_s15, 1152  ;;  %p258_p6 = scmp.lt.s32.totalorder %s44_s15, %s44_s15 }
  0x2c   :  { %p254_p5 = scmp.ne.s32.totalorder %s44_s15, %s253_s24  ;;  %p259_p7 = scmp.lt.s32.totalorder %s253_s24, %s253_s24 }
  0x2e   :  { %p260_p8 = por %p259_p7, %p258_p6 }
  0x30   :  { %p261_p9 = pnand %p260_p8, %p254_p5 }
  0x32   :  { %264 = shalt.err (!%p261_p9)
}
  0x33   :  { %49 = dma.hbm_to_vmem [thread:$0]  %s446_s2, 1152, %s44_s15, [#allocation6], %s319_s27, %s319_s27, %s320_s28  }
  0x34   :  { %309 = dma.done.wait [#allocation3], 1152  }
  0x35   :  { %310 = vsyncadd [#allocation3], 4294966144 }
  0x36   :  { %311 = dma.done.wait [#allocation6], 2304  }
  0x37   :  { %312 = vsyncadd [#allocation6], 4294964992  ;;  %v59_v0 = vld [vmem:[#allocation2] sm:$0xff]  ;;  %v68_v1 = vld [vmem:[#allocation5] sm:$0xff]  ;;  %s322_s25 = smov [#allocation8]   ;;  %s323_s29 = smov [#allocation9]  }
  0x38   :  { %v60_v2 = vld [vmem:[#allocation2 + $0x8] sm:$0xff]  ;;  %s401_s26 = sshll.u32 %s322_s25, 4  ;;  %s403_s30 = sshll.u32 %s323_s29, 4  ;;  %v77_v3 = vmul.f32 0.99, %v68_v1  ;;  %v69_v5 = vld [vmem:[#allocation5 + $0x8] sm:$0xff]  ;;  %s406_s26 = int_to_ptr.vmem [resolvable:$true] %s401_s26  ;;  %s176_s30 = int_to_ptr.vmem [resolvable:$true] %s403_s30 }
  0x39   :  { %v86_v4 = vmul.f32 0.01, %v59_v0  ;;  %v61_v6 = vld [vmem:[#allocation2 + $0x10] sm:$0xff]  ;;  %v78_v7 = vmul.f32 0.99, %v69_v5  ;;  %v70_v9 = vld [vmem:[#allocation5 + $0x10] sm:$0xff]  ;;  %p270_p11 = scmp.lt.s32.totalorder %s406_s26, %s406_s26 }
  0x3a   :  { %v87_v8 = vmul.f32 0.01, %v60_v2  ;;  %v62_v10 = vld [vmem:[#allocation2 + $0x18] sm:$0xff]  ;;  %v79_v12 = vmul.f32 0.99, %v70_v9  ;;  %v71_v14 = vld [vmem:[#allocation5 + $0x18] sm:$0xff] }
  0x3b   :  { %v95_v11 = vadd.f32 %v86_v4, %v77_v3  ;;  %v88_v13 = vmul.f32 0.01, %v61_v6  ;;  %v63_v15 = vld [vmem:[#allocation2 + $0x20] sm:$0xff]  ;;  %v80_v17 = vmul.f32 0.99, %v71_v14  ;;  %v72_v19 = vld [vmem:[#allocation5 + $0x20] sm:$0xff] }
  0x3c   :  { %v96_v16 = vadd.f32 %v87_v8, %v78_v7  ;;  %v89_v18 = vmul.f32 0.01, %v62_v10  ;;  %v64_v20 = vld [vmem:[#allocation2 + $0x28] sm:$0xff]  ;;  %v81_v22 = vmul.f32 0.99, %v72_v19  ;;  %v73_v24 = vld [vmem:[#allocation5 + $0x28] sm:$0xff] }
  0x3d   :  { %104 = vst [vmem:[#allocation8] sm:$0xff] %v95_v11  ;;  %v97_v21 = vadd.f32 %v88_v13, %v79_v12  ;;  %v90_v23 = vmul.f32 0.01, %v63_v15  ;;  %v65_v25 = vld [vmem:[#allocation2 + $0x30] sm:$0xff]  ;;  %v82_v27 = vmul.f32 0.99, %v73_v24 }
  0x3e   :  { %105 = vst [vmem:[#allocation8 + $0x8] sm:$0xff] %v96_v16  ;;  %v98_v26 = vadd.f32 %v89_v18, %v80_v17  ;;  %v91_v28 = vmul.f32 0.01, %v64_v20  ;;  %v74_v29 = vld [vmem:[#allocation5 + $0x30] sm:$0xff]  ;;  %v92_v33 = vmul.f32 0.01, %v65_v25 }
  0x3f   :  { %v66_v30 = vld [vmem:[#allocation2 + $0x38] sm:$0xff]  ;;  %106 = vst [vmem:[#allocation8 + $0x10] sm:$0xff] %v97_v21  ;;  %v99_v31 = vadd.f32 %v90_v23, %v81_v22  ;;  %v83_v32 = vmul.f32 0.99, %v74_v29  ;;  %v75_v34 = vld [vmem:[#allocation5 + $0x38] sm:$0xff]  ;;  %v76_v39 = vld [vmem:[#allocation5 + $0x40] sm:$0xff] }
  0x40   :  { %v67_v35 = vld [vmem:[#allocation2 + $0x40] sm:$0xff]  ;;  %107 = vst [vmem:[#allocation8 + $0x18] sm:$0xff] %v98_v26  ;;  %v100_v36 = vadd.f32 %v91_v28, %v82_v27  ;;  %v84_v37 = vmul.f32 0.99, %v75_v34  ;;  %v93_v38 = vmul.f32 0.01, %v66_v30 }
  0x41   :  { %v113_v40 = vld [vmem:[#allocation7] sm:$0xff]  ;;  %108 = vst [vmem:[#allocation8 + $0x20] sm:$0xff] %v99_v31  ;;  %v101_v41 = vadd.f32 %v92_v33, %v83_v32  ;;  %v85_v42 = vmul.f32 0.99, %v76_v39  ;;  %v94_v43 = vmul.f32 0.01, %v67_v35 }
  0x42   :  { %v122_v44 = vmul.f32 0.95, %v113_v40  ;;  %109 = vst [vmem:[#allocation8 + $0x28] sm:$0xff] %v100_v36  ;;  %v102_v45 = vadd.f32 %v93_v38, %v84_v37  ;;  %v131_v46 = vmul.f32 0.05, %v59_v0  ;;  %v114_v47 = vld [vmem:[#allocation7 + $0x8] sm:$0xff] }
  0x43   :  { %v132_v48 = vmul.f32 0.05, %v60_v2  ;;  %v115_v49 = vld [vmem:[#allocation7 + $0x10] sm:$0xff]  ;;  %110 = vst [vmem:[#allocation8 + $0x30] sm:$0xff] %v101_v41  ;;  %v103_v50 = vadd.f32 %v94_v43, %v85_v42  ;;  %v123_v51 = vmul.f32 0.95, %v114_v47 }
  0x44   :  { %v124_v52 = vmul.f32 0.95, %v115_v49  ;;  %v133_v53 = vmul.f32 0.05, %v61_v6  ;;  %111 = vst [vmem:[#allocation8 + $0x38] sm:$0xff] %v102_v45  ;;  %v140_v54 = vadd.f32 %v131_v46, %v122_v44  ;;  %v116_v55 = vld [vmem:[#allocation7 + $0x18] sm:$0xff] }
  0x45   :  { %v134_v56 = vmul.f32 0.05, %v62_v10  ;;  %v117_v57 = vld [vmem:[#allocation7 + $0x20] sm:$0xff]  ;;  %v135_v58 = vmul.f32 0.05, %v63_v15  ;;  %112 = vst [vmem:[#allocation8 + $0x40] sm:$0xff] %v103_v50  ;;  %v141_v59 = vadd.f32 %v132_v48, %v123_v51 }
  0x46   :  { %v142_v60 = vadd.f32 %v133_v53, %v124_v52  ;;  %v125_v61 = vmul.f32 0.95, %v116_v55  ;;  %v126_v62 = vmul.f32 0.95, %v117_v57  ;;  %v118_v63 = vld [vmem:[#allocation7 + $0x28] sm:$0xff]  ;;  %v119_v0 = vld [vmem:[#allocation7 + $0x30] sm:$0xff] }
  0x47   :  { %149 = vst [vmem:[#allocation9] sm:$0xff] %v140_v54  ;;  %v127_v1 = vmul.f32 0.95, %v118_v63  ;;  %v136_v2 = vmul.f32 0.05, %v64_v20  ;;  %150 = vst [vmem:[#allocation9 + $0x8] sm:$0xff] %v141_v59 }
  0x48   :  { %v128_v3 = vmul.f32 0.95, %v119_v0  ;;  %151 = vst [vmem:[#allocation9 + $0x10] sm:$0xff] %v142_v60  ;;  %v143_v4 = vadd.f32 %v134_v56, %v125_v61  ;;  %v144_v5 = vadd.f32 %v135_v58, %v126_v62  ;;  %v137_v6 = vmul.f32 0.05, %v65_v25  ;;  %v120_v7 = vld [vmem:[#allocation7 + $0x38] sm:$0xff] }
  0x49   :  { %v138_v8 = vmul.f32 0.05, %v66_v30  ;;  %v121_v9 = vld [vmem:[#allocation7 + $0x40] sm:$0xff]  ;;  %v145_v10 = vadd.f32 %v136_v2, %v127_v1  ;;  %v129_v11 = vmul.f32 0.95, %v120_v7  ;;  %s265_s2 = scalar_lea.vmem %s406_s26, 1152 }
  0x4a   :  { %v130_v12 = vmul.f32 0.95, %v121_v9  ;;  %v139_v13 = vmul.f32 0.05, %v67_v35  ;;  %152 = vst [vmem:[#allocation9 + $0x18] sm:$0xff] %v143_v4  ;;  %153 = vst [vmem:[#allocation9 + $0x20] sm:$0xff] %v144_v5  ;;  %v146_v14 = vadd.f32 %v137_v6, %v128_v3  ;;  %p266_p10 = scmp.ne.s32.totalorder %s406_s26, %s265_s2  ;;  %p271_p12 = scmp.lt.s32.totalorder %s265_s2, %s265_s2 }
  0x4c   :  { %p272_p13 = por %p271_p12, %p270_p11 }
  0x4e   :  { %p273_p0 = pnand %p272_p13, %p266_p10 }
  0x50   :  { %276 = shalt.err (!%p273_p0)
}
  0x51   :  { %s277_s7 = scalar_lea.hbm %s447_s3, 1152 }
  0x52   :  { %p278_p1 = scmp.ne.s32.totalorder %s447_s3, %s277_s7  ;;  %p281_p2 = scmp.lt.u32.totalorder %s277_s7, %s447_s3 }
  0x54   :  { %p283_p3 = pnand %p281_p2, %p278_p1 }
  0x56   :  { %286 = shalt.err (!%p283_p3)
}
  0x57   :  { %169 = dma.vmem_to_hbm [thread:$0]  %s406_s26, 1152, %s447_s3, [#allocation4], %s319_s27, %s319_s27, %s320_s28   ;;  %154 = vst [vmem:[#allocation9 + $0x28] sm:$0xff] %v145_v10  ;;  %v147_v15 = vadd.f32 %v138_v8, %v129_v11  ;;  %v148_v16 = vadd.f32 %v139_v13, %v130_v12  ;;  %155 = vst [vmem:[#allocation9 + $0x30] sm:$0xff] %v146_v14 }
  0x58   :  { %s287_s13 = scalar_lea.vmem %s176_s30, 1152  ;;  %p292_p5 = scmp.lt.s32.totalorder %s176_s30, %s176_s30 }
  0x59   :  { %156 = vst [vmem:[#allocation9 + $0x38] sm:$0xff] %v147_v15  ;;  %157 = vst [vmem:[#allocation9 + $0x40] sm:$0xff] %v148_v16  ;;  %p288_p4 = scmp.ne.s32.totalorder %s176_s30, %s287_s13  ;;  %p293_p6 = scmp.lt.s32.totalorder %s287_s13, %s287_s13 }
  0x5b   :  { %p294_p7 = por %p293_p6, %p292_p5 }
  0x5d   :  { %p295_p8 = pnand %p294_p7, %p288_p4 }
  0x5f   :  { %298 = shalt.err (!%p295_p8)
}
  0x60   :  { %s299_s16 = scalar_lea.hbm %s448_s4, 1152 }
  0x61   :  { %p300_p9 = scmp.ne.s32.totalorder %s448_s4, %s299_s16  ;;  %p303_p10 = scmp.lt.u32.totalorder %s299_s16, %s448_s4 }
  0x63   :  { %p305_p11 = pnand %p303_p10, %p300_p9 }
  0x65   :  { %308 = shalt.err (!%p305_p11)
}
  0x66   :  { %181 = dma.vmem_to_hbm [thread:$0]  %s176_s30, 1152, %s448_s4, [#allocation10], %s319_s27, %s319_s27, %s320_s28  }
  0x67   :  { %313 = dma.done.wait [#allocation4], 1152  }
  0x68   :  { %314 = vsyncadd [#allocation4], 4294966144 }
  0x69   :  { %315 = dma.done.wait [#allocation10], 1152  }
  0x6a   :  { %316 = vsyncadd [#allocation10], 4294966144 }
  0x6b   :  { %188 = vsyncpa [#allocation3], 1 }
  0x6c   :  { %189 = vsyncpa [#allocation6], 1 }
  0x6d   :  { %190 = vsyncpa [#allocation4], 1 }
  0x6e   :  { %191 = vsyncpa [#allocation10], 1 }

</bundles_post_ra>
